<compile_context>
chip_gen: v7x
topology: tpu7x:2x2x1
jax: 0.10.0
libtpu: 0.0.40
codegen_flags: <defaults>
</compile_context>

<pallas_src>
import functools

import jax
import jax.numpy as jnp
from jax.experimental import pallas as pl
from jax.experimental.pallas import tpu as pltpu


# --------------------------------------------------------------------------- #
# Small helpers
# --------------------------------------------------------------------------- #
def _round_up(x, m):
    return (x + m - 1) // m * m


def _row_tile(rows):
    """Rows per grid step for the row-tiled linear kernels."""
    for t in (256, 128, 64, 32, 16, 8):
        if rows % t == 0:
            return t
    return rows  # tiny / irregular: single full-extent block (still legal)


# --------------------------------------------------------------------------- #
# Kernel 1 & 3: row-tiled linear layer (x @ W [+ b])
# --------------------------------------------------------------------------- #
def _linear_nobias_kernel(x_ref, w_ref, o_ref):
    acc = jnp.dot(x_ref[...].astype(w_ref.dtype), w_ref[...],
                  preferred_element_type=jnp.float32)
    o_ref[...] = acc.astype(o_ref.dtype)


def _linear_bias_kernel(x_ref, w_ref, b_ref, o_ref):
    acc = jnp.dot(x_ref[...].astype(w_ref.dtype), w_ref[...],
                  preferred_element_type=jnp.float32)
    o_ref[...] = (acc + b_ref[...]).astype(o_ref.dtype)


def _linear_pallas(x2, w, bias, out_dtype):
    """x2: (rows, d_in), w: (d_in, d_out), bias: (1, d_out) or None."""
    rows, d_in = x2.shape
    d_out = w.shape[1]
    t_r = _row_tile(rows)
    grid = (rows // t_r,)

    in_specs = [
        pl.BlockSpec((t_r, d_in), lambda i: (i, 0)),
        pl.BlockSpec((d_in, d_out), lambda i: (0, 0)),
    ]
    operands = (x2, w)
    kernel = _linear_nobias_kernel
    if bias is not None:
        in_specs.append(pl.BlockSpec((1, d_out), lambda i: (0, 0)))
        operands = (x2, w, bias)
        kernel = _linear_bias_kernel

    cost = pl.CostEstimate(
        flops=2 * rows * d_in * d_out,
        transcendentals=0,
        bytes_accessed=int(x2.size * x2.dtype.itemsize
                           + w.size * w.dtype.itemsize
                           + rows * d_out * jnp.dtype(out_dtype).itemsize),
    )

    return pl.pallas_call(
        kernel,
        out_shape=jax.ShapeDtypeStruct((rows, d_out), out_dtype),
        grid_spec=pltpu.PrefetchScalarGridSpec(
            num_scalar_prefetch=0,
            grid=grid,
            in_specs=in_specs,
            out_specs=pl.BlockSpec((t_r, d_out), lambda i: (i, 0)),
        ),
        compiler_params=pltpu.CompilerParams(
            dimension_semantics=("parallel",)),
        cost_estimate=cost,
    )(*operands)


# --------------------------------------------------------------------------- #
# Kernel 2: flash / online-softmax attention over head-major q, k, v
# --------------------------------------------------------------------------- #
def _flash_attn_kernel(q_ref, k_ref, v_ref, o_ref, m_ref, l_ref, acc_ref,
                       *, n_valid, t_kv):
    """One (batch, q-tile, kv-tile) step.

    q_ref   : (H, Tq,  dh)   (already scaled by dim_head**-0.5 via the weights)
    k_ref   : (H, Tkv, dh)
    v_ref   : (H, Tkv, dh)
    o_ref   : (H, Tq,  dh)   written only at the last kv step
    m/l/acc : f32 VMEM scratch carrying the online-softmax state over kv steps
    """
    ki = pl.program_id(2)

    @pl.when(ki == 0)
    def _():
        m_ref[...] = jnp.full(m_ref.shape, -jnp.inf, dtype=m_ref.dtype)
        l_ref[...] = jnp.zeros(l_ref.shape, dtype=l_ref.dtype)
        acc_ref[...] = jnp.zeros(acc_ref.shape, dtype=acc_ref.dtype)

    # scores: (H, Tq, Tkv), batched over heads, accumulated in f32 on the MXU
    s = jax.lax.dot_general(q_ref[...], k_ref[...],
                            (((2,), (2,)), ((0,), (0,))),
                            preferred_element_type=jnp.float32)

    if n_valid is not None:  # static: only emitted when N was padded
        key_pos = ki * t_kv + jax.lax.broadcasted_iota(jnp.int32, s.shape, 2)
        s = jnp.where(key_pos < n_valid, s, -1e30)

    m_prev = m_ref[...]
    m_new = jnp.maximum(m_prev, jnp.max(s, axis=-1, keepdims=True))
    alpha = jnp.exp(m_prev - m_new)                       # f32
    p = jnp.exp(s - m_new)                                # f32
    l_ref[...] = alpha * l_ref[...] + jnp.sum(p, axis=-1, keepdims=True)
    pv = jax.lax.dot_general(p.astype(v_ref.dtype), v_ref[...],
                             (((2,), (1,)), ((0,), (0,))),
                             preferred_element_type=jnp.float32)  # (H, Tq, dh)
    acc_ref[...] = alpha * acc_ref[...] + pv
    m_ref[...] = m_new

    @pl.when(ki == pl.num_programs(2) - 1)
    def _():
        inv_l = pl.reciprocal(l_ref[...], approx=True)    # EUP slot, ~2^-12 rel err
        o_ref[...] = (acc_ref[...] * inv_l).astype(o_ref.dtype)


def _flash_attention_pallas(q, k, v, *, batch, heads, t_q, t_kv, n_valid,
                            out_dtype):
    """q/k/v: (batch*heads, n_pad, dh) head-major.  Returns same shape."""
    bh, n_pad, dh = q.shape
    grid = (batch, n_pad // t_q, n_pad // t_kv)
    kernel = functools.partial(_flash_attn_kernel, n_valid=n_valid, t_kv=t_kv)

    cost = pl.CostEstimate(
        flops=4 * bh * n_pad * n_pad * dh,
        transcendentals=bh * n_pad * n_pad,
        bytes_accessed=int(3 * q.size * q.dtype.itemsize
                           + q.size * jnp.dtype(out_dtype).itemsize),
    )

    return pl.pallas_call(
        kernel,
        out_shape=jax.ShapeDtypeStruct((bh, n_pad, dh), out_dtype),
        grid_spec=pltpu.PrefetchScalarGridSpec(
            num_scalar_prefetch=0,
            grid=grid,
            in_specs=[
                pl.BlockSpec((heads, t_q, dh), lambda b, qi, ki: (b, qi, 0)),
                pl.BlockSpec((heads, t_kv, dh), lambda b, qi, ki: (b, ki, 0)),
                pl.BlockSpec((heads, t_kv, dh), lambda b, qi, ki: (b, ki, 0)),
            ],
            out_specs=pl.BlockSpec((heads, t_q, dh),
                                   lambda b, qi, ki: (b, qi, 0)),
            scratch_shapes=[
                pltpu.VMEM((heads, t_q, 1), jnp.float32),   # running max
                pltpu.VMEM((heads, t_q, 1), jnp.float32),   # running sum
                pltpu.VMEM((heads, t_q, dh), jnp.float32),  # running acc
            ],
        ),
        compiler_params=pltpu.CompilerParams(
            dimension_semantics=("parallel", "parallel", "arbitrary")),
        cost_estimate=cost,
    )(q, k, v)


# --------------------------------------------------------------------------- #
# Wrapper: full VisionAttentionLayer forward
# --------------------------------------------------------------------------- #
def vision_attention_pallas(x, w_qkv, w_out, b_out, *, heads, dim_head,
                            matmul_dtype=jnp.bfloat16):
    """x: (B, N, D).  w_qkv: (D, 3*heads*dim_head).  w_out: (heads*dim_head, D).

    Assumes project_out=True (the module's Identity path only triggers for
    heads == 1 and dim_head == dim).  Dropout is p=0 (eval) => identity.
    Matmul operands run in `matmul_dtype` (bf16 default); softmax and all
    accumulation stay in f32.
    """
    B, N, D = x.shape
    inner = heads * dim_head
    assert w_qkv.shape == (D, 3 * inner)
    assert w_out.shape == (inner, D)
    assert b_out.shape == (D,)

    # ---- one-time parameter prep (XLA, outside the kernels) ----------------
    scale = dim_head ** (-0.5)
    # Fold the softmax scale into the Q columns of the fused QKV weight.
    wqkv = jnp.concatenate([w_qkv[:, :inner] * scale, w_qkv[:, inner:]],
                           axis=-1).astype(matmul_dtype)

    # Lane-dense output projection: pad D up to a multiple of 128.
    Dp = _round_up(D, 128)
    wo = w_out.astype(matmul_dtype)
    b2 = b_out.reshape(1, D).astype(jnp.float32)
    if Dp != D:
        wo = jnp.pad(wo, ((0, 0), (0, Dp - D)))
        b2 = jnp.pad(b2, ((0, 0), (0, Dp - D)))

    # ---- pad the token axis so attention tiles are sublane/lane friendly ---
    if N <= 128:
        n_pad = _round_up(N, 8)
        t_q = t_kv = n_pad
    else:
        n_pad = _round_up(N, 128)
        t_q = t_kv = 128
    x_p = x if n_pad == N else jnp.pad(x, ((0, 0), (0, n_pad - N), (0, 0)))
    rows = B * n_pad

    # ---- 1) fused QKV projection: one large-K matmul per row tile ----------
    x2 = x_p.reshape(rows, D)
    qkv = _linear_pallas(x2, wqkv, bias=None, out_dtype=matmul_dtype)

    # Head-major relayout (HBM layout plumbing): (rows, 3*inner) -> 3 x (B*H, n_pad, dh)
    qkv = qkv.reshape(B, n_pad, 3, heads, dim_head)
    qkv = qkv.transpose(2, 0, 3, 1, 4).reshape(3, B * heads, n_pad, dim_head)
    q, k, v = qkv[0], qkv[1], qkv[2]

    # ---- 2) flash attention over (batch, q-tile, kv-tile) ------------------
    attn = _flash_attention_pallas(
        q, k, v, batch=B, heads=heads, t_q=t_q, t_kv=t_kv,
        n_valid=(N if n_pad != N else None), out_dtype=matmul_dtype)

    # Back to token-major (HBM layout plumbing): (B*H, n_pad, dh) -> (rows, inner)
    attn = attn.reshape(B, heads, n_pad, dim_head)
    attn = attn.transpose(0, 2, 1, 3).reshape(rows, inner)

    # ---- 3) output projection: single contraction over inner = H*dh --------
    out = _linear_pallas(attn, wo, bias=b2, out_dtype=x.dtype)   # (rows, Dp)
    out = out.reshape(B, n_pad, Dp)
    return out[:, :N, :D]


# --------------------------------------------------------------------------- #
# Pure-JAX reference (matches the PyTorch forward semantics)
# --------------------------------------------------------------------------- #
def vision_attention_ref(x, w_qkv, w_out, b_out, *, heads, dim_head):
    B, N, D = x.shape
    scale = dim_head ** (-0.5)
    qkv = x @ w_qkv
    q, k, v = jnp.split(qkv, 3, axis=-1)

    def to_heads(t):
        return t.reshape(B, N, heads, dim_head).transpose(0, 2, 1, 3)

    q, k, v = map(to_heads, (q, k, v))
    dots = jnp.einsum("bhqd,bhkd->bhqk", q, k) * scale
    attn = jax.nn.softmax(dots, axis=-1)
    out = jnp.einsum("bhqk,bhkd->bhqd", attn, v)
    out = out.transpose(0, 2, 1, 3).reshape(B, N, heads * dim_head)
    return out @ w_out + b_out


# --------------------------------------------------------------------------- #
# Self-test
# --------------------------------------------------------------------------- #
if __name__ == "__main__":
    # Config 1: small, "nice" shapes.
    B, N, DIM = 2, 8, 32
    HEADS, DIM_HEAD = 4, 8
    INNER = HEADS * DIM_HEAD

    key = jax.random.PRNGKey(0)
    kx, kq, kw, kb = jax.random.split(key, 4)
    x = jax.random.normal(kx, (B, N, DIM), dtype=jnp.float32)
    w_qkv = jax.random.normal(kq, (DIM, 3 * INNER), dtype=jnp.float32) * 0.05
    w_out = jax.random.normal(kw, (INNER, DIM), dtype=jnp.float32) * 0.05
    b_out = jax.random.normal(kb, (DIM,), dtype=jnp.float32) * 0.05

    y_ref = vision_attention_ref(x, w_qkv, w_out, b_out,
                                 heads=HEADS, dim_head=DIM_HEAD)

    # f32 matmul operands: tight check (only the approx reciprocal differs).
    y32 = vision_attention_pallas(x, w_qkv, w_out, b_out, heads=HEADS,
                                  dim_head=DIM_HEAD, matmul_dtype=jnp.float32)
    jax.block_until_ready(y32)
    assert y32.shape == (B, N, DIM)
    assert jnp.allclose(y32, y_ref, atol=1e-3, rtol=1e-3), "f32 path mismatch"

    # Default bf16 matmul operands (MXU fast path): looser tolerance.
    y16 = vision_attention_pallas(x, w_qkv, w_out, b_out,
                                  heads=HEADS, dim_head=DIM_HEAD)
    jax.block_until_ready(y16)
    assert jnp.allclose(y16, y_ref, atol=1e-2, rtol=1e-2), "bf16 path mismatch"

    # Config 2: exercises odd batch, N padding + key masking, Dp padding.
    B2, N2, D2, H2, DH2 = 3, 10, 48, 2, 8
    I2 = H2 * DH2
    k1, k2, k3, k4 = jax.random.split(jax.random.PRNGKey(1), 4)
    x2 = jax.random.normal(k1, (B2, N2, D2), dtype=jnp.float32)
    wq2 = jax.random.normal(k2, (D2, 3 * I2), dtype=jnp.float32) * 0.05
    wo2 = jax.random.normal(k3, (I2, D2), dtype=jnp.float32) * 0.05
    bo2 = jax.random.normal(k4, (D2,), dtype=jnp.float32) * 0.05

    y2 = vision_attention_pallas(x2, wq2, wo2, bo2, heads=H2, dim_head=DH2,
                                 matmul_dtype=jnp.float32)
    jax.block_until_ready(y2)
    y2_ref = vision_attention_ref(x2, wq2, wo2, bo2, heads=H2, dim_head=DH2)
    assert y2.shape == (B2, N2, D2)
    assert jnp.allclose(y2, y2_ref, atol=1e-3, rtol=1e-3), "padded path mismatch"

    print("KERNEL_OK")
</pallas_src>

<mosaic_0001>
module attributes {stable_mosaic.version = 11 : i64} {
  func.func @_linear_nobias_kernel(%arg0: i32, %arg1: memref<16x32xf32, #tpu.memory_space<vmem>>, %arg2: memref<32x96xf32, #tpu.memory_space<vmem>>, %arg3: memref<16x96xf32, #tpu.memory_space<vmem>>) attributes {dimension_semantics = [#tpu.dimension_semantics<parallel>], iteration_bounds = array<i64: 1>, scalar_prefetch = 0 : i64, scratch_operands = 0 : i64, tpu.core_type = #tpu.core_type<tc>, window_params = [{transform_indices = @transform_0, window_bounds = array<i64: 16, 32>}, {pipeline_mode = #tpu.pipeline_mode<synchronous>, transform_indices = @transform_1, window_bounds = array<i64: 32, 96>}, {transform_indices = @transform_2, window_bounds = array<i64: 16, 96>}]} {
    %c0 = arith.constant 0 : index
    %c0_0 = arith.constant 0 : index
    %0 = vector.load %arg1[%c0, %c0_0] : memref<16x32xf32, #tpu.memory_space<vmem>>, vector<16x32xf32>
    %c0_1 = arith.constant 0 : index
    %c0_2 = arith.constant 0 : index
    %1 = vector.load %arg2[%c0_1, %c0_2] : memref<32x96xf32, #tpu.memory_space<vmem>>, vector<32x96xf32>
    %cst = arith.constant dense<0.000000e+00> : vector<16x96xf32>
    %2 = tpu.matmul %0, %1, %cst {dimension_numbers = #tpu.dot_dimension_numbers<[1], [0], [0], [1], [0, 0, 1, 1], [], []>} : vector<16x32xf32>, vector<32x96xf32>, vector<16x96xf32> -> vector<16x96xf32>
    %c0_3 = arith.constant 0 : index
    %c0_4 = arith.constant 0 : index
    %3 = vector.load %arg3[%c0_3, %c0_4] : memref<16x96xf32, #tpu.memory_space<vmem>>, vector<16x96xf32>
    tpu.vector_store %arg3[%c0_3, %c0_4], %2 {strides = array<i32>} : memref<16x96xf32, #tpu.memory_space<vmem>>, vector<16x96xf32>,
    return
  }
  func.func @transform_0(%arg0: i32) -> (i32, i32) {
    %c0_i32 = arith.constant 0 : i32
    %c0_i32_0 = arith.constant 0 : i32
    return %arg0, %c0_i32 : i32, i32
  }
  func.func @transform_1(%arg0: i32) -> (i32, i32) {
    %c0_i32 = arith.constant 0 : i32
    %c0_i32_0 = arith.constant 0 : i32
    %c0_i32_1 = arith.constant 0 : i32
    return %c0_i32, %c0_i32_0 : i32, i32
  }
  func.func @transform_2(%arg0: i32) -> (i32, i32) {
    %c0_i32 = arith.constant 0 : i32
    %c0_i32_0 = arith.constant 0 : i32
    return %arg0, %c0_i32 : i32, i32
  }
}

</mosaic_0001>

<bundles_post_ra>
// kernel: tpu_custom_call.1
= control target key start
LH: loop header
LB: loop body
LE: loop exit
PB: predicated region body
PF: predicated region fallthrough
CT: control target
= control target key end

     0   :  { %7 = vsyncpa [#allocation3], 0  ;;  %s318_s0 = inlined_call_operand.hbm [shape: f32[16,32], index: 0, kind: input, shape index: {}]   ;;  %s319_s1 = inlined_call_operand.hbm [shape: f32[32,96], index: 1, kind: input, shape index: {}]   ;;  %s320_s2 = inlined_call_operand.hbm [shape: f32[16,96], index: 2, kind: output, shape index: {}]  }
   0x1   :  { %8 = vsyncpa [#allocation6], 0 }
   0x2   :  { %9 = vsyncpa [#allocation4], 0  ;;  %s253_s9 = smov [#allocation2]   ;;  %s181_s13 = scalar_lea.hbm %s318_s0, 256 }
   0x3   :  { %s15_s10 = sshll.u32 %s253_s9, 4  ;;  %p182_p0 = scmp.ne.s32.totalorder %s318_s0, %s181_s13  ;;  %s16_s10 = int_to_ptr.vmem [resolvable:$true] %s15_s10 }
   0x4   :  { %p185_p1 = scmp.lt.u32.totalorder %s181_s13, %s318_s0 }
   0x6   :  { %p187_p2 = pnand %p185_p1, %p182_p0 }
   0x8   :  { %190 = shalt.err (!%p187_p2)
}
   0x9   :  { %s191_s18 = scalar_lea.vmem %s16_s10, 256  ;;  %p196_p4 = scmp.lt.s32.totalorder %s16_s10, %s16_s10 }
   0xa   :  { %p192_p3 = scmp.ne.s32.totalorder %s16_s10, %s191_s18  ;;  %p197_p5 = scmp.lt.s32.totalorder %s191_s18, %s191_s18 }
   0xc   :  { %p198_p6 = por %p197_p5, %p196_p4 }
   0xe   :  { %p199_p7 = pnand %p198_p6, %p192_p3 }
  0x10   :  { %202 = shalt.err (!%p199_p7)
}
  0x11   :  { %s254_s19 = smov 128   ;;  %s255_s20 = smov 8  }
  0x12   :  { %21 = dma.hbm_to_vmem [thread:$0]  %s318_s0, 256, %s16_s10, [#allocation3], %s254_s19, %s254_s19, %s255_s20  }
  0x13   :  { %s256_s23 = smov [#allocation5]   ;;  %s203_s27 = scalar_lea.hbm %s319_s1, 512 }
  0x14   :  { %s27_s24 = sshll.u32 %s256_s23, 4  ;;  %p204_p8 = scmp.ne.s32.totalorder %s319_s1, %s203_s27  ;;  %s28_s24 = int_to_ptr.vmem [resolvable:$true] %s27_s24 }
  0x15   :  { %p207_p9 = scmp.lt.u32.totalorder %s203_s27, %s319_s1 }
  0x17   :  { %p209_p10 = pnand %p207_p9, %p204_p8 }
  0x19   :  { %212 = shalt.err (!%p209_p10)
}
  0x1a   :  { %s213_s4 = scalar_lea.vmem %s28_s24, 512  ;;  %p218_p12 = scmp.lt.s32.totalorder %s28_s24, %s28_s24 }
  0x1b   :  { %p214_p11 = scmp.ne.s32.totalorder %s28_s24, %s213_s4  ;;  %p219_p13 = scmp.lt.s32.totalorder %s213_s4, %s213_s4 }
  0x1d   :  { %p220_p0 = por %p219_p13, %p218_p12 }
  0x1f   :  { %p221_p1 = pnand %p220_p0, %p214_p11 }
  0x21   :  { %224 = shalt.err (!%p221_p1)
}
  0x22   :  { %33 = dma.hbm_to_vmem [thread:$0]  %s319_s1, 512, %s28_s24, [#allocation6], %s254_s19, %s254_s19, %s255_s20  }
  0x23   :  { %247 = dma.done.wait [#allocation3], 256  }
  0x24   :  { %248 = vsyncadd [#allocation3], 4294967040 }
  0x25   :  { %249 = dma.done.wait [#allocation6], 512  }
  0x26   :  { %250 = vsyncadd [#allocation6], 4294966784  ;;  %vm46_vm0 = vcmask 261120   ;;  %v42_v0 = vld [vmem:[#allocation5] sm:$0xff]  ;;  %v43_v1 = vld [vmem:[#allocation5 + $0x8] sm:$0xff]  ;;  %s257_s1 = smov [#allocation7]  }
  0x27   :  { %v44_v2 = vld [vmem:[#allocation5 + $0x10] sm:$0xff]  ;;  %v168_v3 = vpack.c.bf16 %v43_v1, %v42_v0  ;;  %v45_v4 = vld [vmem:[#allocation5 + $0x18] sm:$0xff]  ;;  %s136_s6 = sshll.u32 %s257_s1, 4  ;;  %vm128_vm1 = vcmask 785408   ;;  %s137_s6 = int_to_ptr.vmem [resolvable:$true] %s136_s6 }
  0x28   :  { %v40_v5 = vld [vmem:[#allocation2] sm:$0xff]  ;;  %v172_v6 = vpack.c.bf16 %v45_v4, %v44_v2  ;;  %v41_v7 = vld [vmem:[#allocation2 + $0x8] sm:$0xff]  ;;  %s225_s7 = scalar_lea.vmem %s137_s6, 256  ;;  %p230_p3 = scmp.lt.s32.totalorder %s137_s6, %s137_s6 }
  0x29   :  { %165 = vmatprep.mubr.msk.f32.mxu0 %vm46_vm0, %v40_v5  ;;  %169 = vmatprep.subr.bf16.mxu0 %v168_v3  ;;  %p226_p2 = scmp.ne.s32.totalorder %s137_s6, %s225_s7  ;;  %p231_p4 = scmp.lt.s32.totalorder %s225_s7, %s225_s7 }
  0x2a   :  { %171 = vmatpush3.bf16.msra.mxu0 %v168_v3 }
  0x2b   :  { %173 = vmatprep.subr.bf16.mxu0 %v172_v6  ;;  %p232_p5 = por %p231_p4, %p230_p3 }
  0x2d   :  { %p233_p6 = pnand %p232_p5, %p226_p2 }
  0x2e   :  { %175 = vmatpush3.bf16.msra.mxu0 %v172_v6 }
  0x31   :  { %166 = vmatmul.mubr.msk.f32.vlgmr.msra.gmra.mrb[0].mxu0 %vm46_vm0, %v41_v7 }
 0x104   :  { %v167_v8 = vpop.f32.mrb[0].mxu0 }
 0x105   :  { %130 = vst.msk [vmem:[#allocation7 + $0x8] sm:$0xff] %vm128_vm1, %v167_v8  ;;  %v119_v9 = vpop.f32.mrb[1].mxu0 }
 0x106   :  { %129 = vst.msk [vmem:[#allocation7] sm:$0xff] %vm128_vm1, %v119_v9 }
 0x107   :  { %236 = shalt.err (!%p233_p6)
}
 0x108   :  { %s237_s10 = scalar_lea.hbm %s320_s2, 256 }
 0x109   :  { %p238_p7 = scmp.ne.s32.totalorder %s320_s2, %s237_s10  ;;  %p241_p8 = scmp.lt.u32.totalorder %s237_s10, %s320_s2 }
 0x10b   :  { %p243_p9 = pnand %p241_p8, %p238_p7 }
 0x10d   :  { %246 = shalt.err (!%p243_p9)
}
 0x10e   :  { %142 = dma.vmem_to_hbm [thread:$0]  %s137_s6, 256, %s320_s2, [#allocation4], %s254_s19, %s254_s19, %s255_s20  }
 0x10f   :  { %251 = dma.done.wait [#allocation4], 256  }
 0x110   :  { %252 = vsyncadd [#allocation4], 4294967040 }
 0x111   :  { %146 = vsyncpa [#allocation3], 1 }
 0x112   :  { %147 = vsyncpa [#allocation6], 1 }
 0x113   :  { %148 = vsyncpa [#allocation4], 1 }

</bundles_post_ra>
